<compile_context>
chip_gen: v7x
topology: tpu7x:2x2x1
jax: 0.10.0
libtpu: 0.0.40
codegen_flags: <defaults>
</compile_context>

<pallas_src>
import functools

import jax
import jax.numpy as jnp
from jax.experimental import pallas as pl
from jax.experimental.pallas import tpu as pltpu


def _segments(in_size, out_size, k, s, p, off):
    """Static output-index range [lo, hi) for which window offset `off` hits a
    valid input index, plus the first source index.  Outside [lo, hi) the
    source falls in the padding; those outputs are seeded from the clamped
    edge element (replicate), which is exact for max pooling when p <= k//2."""
    del k  # geometry is fully determined by (in_size, out_size, s, p, off)
    lo = max(0, -(-(p - off) // s))                        # ceil((p - off)/s)
    hi = min(out_size, (in_size - 1 - off + p) // s + 1)
    return lo, hi, lo * s + off - p


def _ds(start, size, stride):
    return pl.ds(start, size) if stride == 1 else pl.ds(start, size, stride=stride)


def _maxpool_kernel(x_ref, o_ref, row_ref, *, h, w, ho, wo, kh, kw, sh, sw, ph, pw):
    # x_ref: (h, w, lanes); row_ref scratch: (ho, w, lanes); o_ref: (ho, wo, lanes).

    # ---- row direction: row_ref[r] = max_i x[clamp(r*sh + i - ph)] ----------
    for i in range(kh):
        lo, hi, src = _segments(h, ho, kh, sh, ph, i)
        if hi <= lo:
            continue
        seg = x_ref[_ds(src, hi - lo, sh), :, :]
        if i == 0:
            # Offset 0 seeds every output row; boundary rows (padding > 0 only)
            # replicate the edge row, which their window always contains.
            if lo > 0:
                row_ref[0:lo, :, :] = jnp.broadcast_to(
                    x_ref[0:1, :, :], (lo,) + tuple(x_ref.shape[1:]))
            row_ref[lo:hi, :, :] = seg
            if hi < ho:
                row_ref[hi:ho, :, :] = jnp.broadcast_to(
                    x_ref[h - 1:h, :, :], (ho - hi,) + tuple(x_ref.shape[1:]))
        else:
            row_ref[lo:hi, :, :] = jnp.maximum(row_ref[lo:hi, :, :], seg)

    # ---- column direction: o_ref[:, c] = max_j row_ref[:, clamp(c*sw + j - pw)]
    lanes = o_ref.shape[2]
    for j in range(kw):
        lo, hi, src = _segments(w, wo, kw, sw, pw, j)
        if hi <= lo:
            continue
        seg = row_ref[:, _ds(src, hi - lo, sw), :]
        if j == 0:
            if lo > 0:
                o_ref[:, 0:lo, :] = jnp.broadcast_to(
                    row_ref[:, 0:1, :], (ho, lo, lanes))
            o_ref[:, lo:hi, :] = seg
            if hi < wo:
                o_ref[:, hi:wo, :] = jnp.broadcast_to(
                    row_ref[:, w - 1:w, :], (ho, wo - hi, lanes))
        else:
            o_ref[:, lo:hi, :] = jnp.maximum(o_ref[:, lo:hi, :], seg)


def _pair(v):
    if isinstance(v, (tuple, list)):
        a, b = v
        return int(a), int(b)
    return int(v), int(v)


def _round_up(a, b):
    return -(-a // b) * b


def _device_budgets():
    """(working-set budget, vmem_limit cap) in bytes for the local TPU gen."""
    try:
        kind = jax.devices()[0].device_kind.lower()
    except Exception:
        kind = ""
    if "v5" in kind:                    # v5e: modest blocks, 16 MiB scoped default
        return 14 << 20, 64 << 20
    if "v6" in kind:                    # v6e: 128 MiB physical VMEM
        return 36 << 20, 96 << 20
    # v7x (64 MiB physical per TC) and unknown generations: stay conservative.
    return 30 << 20, 48 << 20


def max_pool2d(x, kernel_size=2, stride=1, padding=0):
    """MaxPool2d over NCHW input, semantics matching torch.nn.MaxPool2d."""
    kh, kw = _pair(kernel_size)
    sh, sw = (kh, kw) if stride is None else _pair(stride)
    ph, pw = _pair(padding)
    if ph > kh // 2 or pw > kw // 2:
        raise ValueError("padding should be at most half of kernel size")
    # TODO(synk): ceil_mode / dilation / return_indices are not implemented.

    n, c, h, w = x.shape
    ho = (h + 2 * ph - kh) // sh + 1
    wo = (w + 2 * pw - kw) // sw + 1
    if ho <= 0 or wo <= 0:
        raise ValueError("pooled output size would be non-positive")

    # Lane-dense layout: (H, W, N*C); pooling shifts never touch the lane axis.
    nc = n * c
    xt = jnp.transpose(x.reshape(nc, h, w), (1, 2, 0))

    # ---- block sizing from the *padded* VMEM footprint ----------------------
    isz = x.dtype.itemsize
    sub = {1: 32, 2: 16, 4: 8}.get(isz, 8)     # sublane tile height per dtype

    def footprint(lane_block):
        lpad = _round_up(max(int(lane_block), 1), 128)
        in_b = h * _round_up(w, sub) * lpad * isz
        out_b = ho * _round_up(wo, sub) * lpad * isz
        scr_b = ho * _round_up(w, sub) * lpad * isz
        return 2 * in_b + 2 * out_b + scr_b    # 2x-buffered in/out + scratch

    budget, vmem_cap = _device_budgets()
    if nc <= 128:
        # Block lane dim equal to the full array dim is always legal.
        # TODO(synk): with nc <= 128 there is a single grid step, so one v7x
        # TensorCore idles for tiny inputs; an H-tiled variant would fix that.
        lnc = nc
    else:
        groups = int(pl.cdiv(nc, 128))
        k = max(1, budget // footprint(128))
        # Keep >= 2 grid steps so v7x megacore has work on both cores.
        k = min(int(k), max(1, int(pl.cdiv(groups, 2))))
        lnc = 128 * k
    num_blocks = int(pl.cdiv(nc, lnc))
    # TODO(synk): for very large H*W the full-spatial block may not fit VMEM
    # even at 128 lanes; fall back to a W-on-lanes variant with H tiling there.
    vmem_limit = int(min(max(2 * footprint(lnc), 32 << 20), vmem_cap))

    kernel = functools.partial(_maxpool_kernel, h=h, w=w, ho=ho, wo=wo,
                               kh=kh, kw=kw, sh=sh, sw=sw, ph=ph, pw=pw)

    out_t = pl.pallas_call(
        kernel,
        out_shape=jax.ShapeDtypeStruct((ho, wo, nc), x.dtype),
        grid_spec=pltpu.PrefetchScalarGridSpec(
            num_scalar_prefetch=0,
            grid=(num_blocks,),
            in_specs=[pl.BlockSpec((h, w, lnc), lambda l: (0, 0, l))],
            out_specs=pl.BlockSpec((ho, wo, lnc), lambda l: (0, 0, l)),
            scratch_shapes=[pltpu.VMEM((ho, w, lnc), x.dtype)],
        ),
        compiler_params=pltpu.CompilerParams(
            dimension_semantics=("parallel",),
            vmem_limit_bytes=vmem_limit),
        cost_estimate=pl.CostEstimate(
            flops=int(nc * ho * wo * max(kh * kw - 1, 0)),
            transcendentals=0,
            bytes_accessed=int((h * w + ho * wo) * nc * isz)),
    )(xt)

    # Back to NCHW.
    return out_t.transpose(2, 0, 1).reshape(n, c, ho, wo)


class DownSample:
    """JAX/Pallas port of the PyTorch DownSample module (pure max-pool, no params)."""

    def __init__(self, kernel_size: int = 2, stride: int = 1, padding: int = 0):
        self.kernel_size = kernel_size
        self.stride = stride
        self.padding = padding

    def __call__(self, x):
        return max_pool2d(x, self.kernel_size, self.stride, self.padding)


def _ref_maxpool(x, kernel_size=2, stride=1, padding=0):
    # Pure-JAX reference for verification (float inputs; -inf padding like torch).
    return jax.lax.reduce_window(
        x, -jnp.inf, jax.lax.max,
        window_dimensions=(1, 1, kernel_size, kernel_size),
        window_strides=(1, 1, stride, stride),
        padding=((0, 0), (0, 0), (padding, padding), (padding, padding)))


if __name__ == "__main__":
    key = jax.random.PRNGKey(0)
    x = jax.random.normal(key, (2, 4, 16, 16), dtype=jnp.float32)

    model = DownSample(kernel_size=2, stride=1, padding=0)
    out = jax.block_until_ready(model(x))
    ref = _ref_maxpool(x, kernel_size=2, stride=1, padding=0)
    assert out.shape == (2, 4, 15, 15), out.shape
    assert jnp.allclose(out, ref), "mismatch vs reference max-pool (padding=0)"

    # Fused-padding path (no jnp.pad HBM round-trip).
    out_p = jax.block_until_ready(max_pool2d(x, kernel_size=2, stride=1, padding=1))
    ref_p = _ref_maxpool(x, kernel_size=2, stride=1, padding=1)
    assert out_p.shape == (2, 4, 17, 17), out_p.shape
    assert jnp.allclose(out_p, ref_p), "mismatch vs reference max-pool (padding=1)"

    print("KERNEL_OK")
</pallas_src>

<mosaic_0001>
module attributes {stable_mosaic.version = 11 : i64} {
  func.func @_maxpool_kernel(%arg0: i32, %arg1: memref<16x16x8xf32, #tpu.memory_space<vmem>>, %arg2: memref<15x15x8xf32, #tpu.memory_space<vmem>>, %arg3: memref<15x16x8xf32, #tpu.memory_space<vmem>>) attributes {dimension_semantics = [#tpu.dimension_semantics<parallel>], iteration_bounds = array<i64: 1>, scalar_prefetch = 0 : i64, scratch_operands = 1 : i64, tpu.core_type = #tpu.core_type<tc>, window_params = [{transform_indices = @transform_0, window_bounds = array<i64: 16, 16, 8>}, {transform_indices = @transform_1, window_bounds = array<i64: 15, 15, 8>}]} {
    %c0 = arith.constant 0 : index
    %c0_0 = arith.constant 0 : index
    %c0_1 = arith.constant 0 : index
    %0 = vector.load %arg1[%c0, %c0_0, %c0_1] : memref<16x16x8xf32, #tpu.memory_space<vmem>>, vector<15x16x8xf32>
    %c0_2 = arith.constant 0 : index
    %c0_3 = arith.constant 0 : index
    %c0_4 = arith.constant 0 : index
    %1 = vector.load %arg3[%c0_2, %c0_3, %c0_4] : memref<15x16x8xf32, #tpu.memory_space<vmem>>, vector<15x16x8xf32>
    tpu.vector_store %arg3[%c0_2, %c0_3, %c0_4], %0 {strides = array<i32>} : memref<15x16x8xf32, #tpu.memory_space<vmem>>, vector<15x16x8xf32>,
    %c1 = arith.constant 1 : index
    %c0_5 = arith.constant 0 : index
    %c0_6 = arith.constant 0 : index
    %2 = vector.load %arg1[%c1, %c0_5, %c0_6] : memref<16x16x8xf32, #tpu.memory_space<vmem>>, vector<15x16x8xf32>
    %c0_7 = arith.constant 0 : index
    %c0_8 = arith.constant 0 : index
    %c0_9 = arith.constant 0 : index
    %3 = vector.load %arg3[%c0_7, %c0_8, %c0_9] : memref<15x16x8xf32, #tpu.memory_space<vmem>>, vector<15x16x8xf32>
    %4 = arith.maximumf %3, %2 : vector<15x16x8xf32>
    %c0_10 = arith.constant 0 : index
    %c0_11 = arith.constant 0 : index
    %c0_12 = arith.constant 0 : index
    %5 = vector.load %arg3[%c0_10, %c0_11, %c0_12] : memref<15x16x8xf32, #tpu.memory_space<vmem>>, vector<15x16x8xf32>
    tpu.vector_store %arg3[%c0_10, %c0_11, %c0_12], %4 {strides = array<i32>} : memref<15x16x8xf32, #tpu.memory_space<vmem>>, vector<15x16x8xf32>,
    %c0_13 = arith.constant 0 : index
    %c0_14 = arith.constant 0 : index
    %c0_15 = arith.constant 0 : index
    %6 = vector.load %arg3[%c0_13, %c0_14, %c0_15] : memref<15x16x8xf32, #tpu.memory_space<vmem>>, vector<15x15x8xf32>
    %c0_16 = arith.constant 0 : index
    %c0_17 = arith.constant 0 : index
    %c0_18 = arith.constant 0 : index
    %7 = vector.load %arg2[%c0_16, %c0_17, %c0_18] : memref<15x15x8xf32, #tpu.memory_space<vmem>>, vector<15x15x8xf32>
    tpu.vector_store %arg2[%c0_16, %c0_17, %c0_18], %6 {strides = array<i32>} : memref<15x15x8xf32, #tpu.memory_space<vmem>>, vector<15x15x8xf32>,
    %c0_19 = arith.constant 0 : index
    %c1_20 = arith.constant 1 : index
    %c0_21 = arith.constant 0 : index
    %8 = vector.load %arg3[%c0_19, %c1_20, %c0_21] : memref<15x16x8xf32, #tpu.memory_space<vmem>>, vector<15x15x8xf32>
    %c0_22 = arith.constant 0 : index
    %c0_23 = arith.constant 0 : index
    %c0_24 = arith.constant 0 : index
    %9 = vector.load %arg2[%c0_22, %c0_23, %c0_24] : memref<15x15x8xf32, #tpu.memory_space<vmem>>, vector<15x15x8xf32>
    %10 = arith.maximumf %9, %8 : vector<15x15x8xf32>
    %c0_25 = arith.constant 0 : index
    %c0_26 = arith.constant 0 : index
    %c0_27 = arith.constant 0 : index
    %11 = vector.load %arg2[%c0_25, %c0_26, %c0_27] : memref<15x15x8xf32, #tpu.memory_space<vmem>>, vector<15x15x8xf32>
    tpu.vector_store %arg2[%c0_25, %c0_26, %c0_27], %10 {strides = array<i32>} : memref<15x15x8xf32, #tpu.memory_space<vmem>>, vector<15x15x8xf32>,
    return
  }
  func.func @transform_0(%arg0: i32) -> (i32, i32, i32) {
    %c0_i32 = arith.constant 0 : i32
    %c0_i32_0 = arith.constant 0 : i32
    %c0_i32_1 = arith.constant 0 : i32
    return %c0_i32, %c0_i32_0, %arg0 : i32, i32, i32
  }
  func.func @transform_1(%arg0: i32) -> (i32, i32, i32) {
    %c0_i32 = arith.constant 0 : i32
    %c0_i32_0 = arith.constant 0 : i32
    %c0_i32_1 = arith.constant 0 : i32
    return %c0_i32, %c0_i32_0, %arg0 : i32, i32, i32
  }
}

</mosaic_0001>

<bundles_post_ra>
// kernel: tpu_custom_call.1
= control target key start
LH: loop header
LB: loop body
LE: loop exit
PB: predicated region body
PF: predicated region fallthrough
CT: control target
= control target key end

     0   :  { %vm38_vm0 = vcmask 64512   ;;  %vm221_vm1 = vcmask 63488   ;;  %s1013_s0 = inlined_call_operand.vmem [shape: f32[16,16,8], index: 0, kind: input, shape index: {}]   ;;  %s1014_s1 = inlined_call_operand.vmem [shape: f32[15,15,8], index: 1, kind: output, shape index: {}]  }
   0x1   :  { %v8_v0 = vld [vmem:[%s1013_s0] sm:$0xff]  ;;  %v9_v1 = vld [vmem:[%s1013_s0 + $0x8] sm:$0xff]  ;;  %v424_v2 = vld [vmem:[%s1013_s0 + $0x10] sm:$0xff] }
   0x2   :  { %39 = vst.msk [vmem:[#allocation2] sm:$0xff] %vm38_vm0, %v8_v0  ;;  %40 = vst.msk [vmem:[#allocation2 + $0x8] sm:$0xff] %vm38_vm0, %v9_v1  ;;  %v433_v3 = vld [vmem:[%s1013_s0 + $0x18] sm:$0xff]  ;;  %v438_v4 = vld [vmem:[%s1013_s0 + $0x20] sm:$0xff] }
   0x3   :  { %41 = vst.msk [vmem:[#allocation2 + $0x10] sm:$0xff] %vm38_vm0, %v424_v2  ;;  %v443_v5 = vld [vmem:[%s1013_s0 + $0x28] sm:$0xff]  ;;  %42 = vst.msk [vmem:[#allocation2 + $0x18] sm:$0xff] %vm38_vm0, %v433_v3  ;;  %v454_v6 = vld [vmem:[%s1013_s0 + $0x30] sm:$0xff] }
   0x4   :  { %43 = vst.msk [vmem:[#allocation2 + $0x20] sm:$0xff] %vm38_vm0, %v438_v4  ;;  %44 = vst.msk [vmem:[#allocation2 + $0x28] sm:$0xff] %vm38_vm0, %v443_v5  ;;  %v459_v7 = vld [vmem:[%s1013_s0 + $0x38] sm:$0xff]  ;;  %v464_v8 = vld [vmem:[%s1013_s0 + $0x40] sm:$0xff] }
   0x5   :  { %45 = vst.msk [vmem:[#allocation2 + $0x30] sm:$0xff] %vm38_vm0, %v454_v6  ;;  %46 = vst.msk [vmem:[#allocation2 + $0x38] sm:$0xff] %vm38_vm0, %v459_v7  ;;  %v475_v9 = vld [vmem:[%s1013_s0 + $0x48] sm:$0xff]  ;;  %v480_v10 = vld [vmem:[%s1013_s0 + $0x50] sm:$0xff] }
   0x6   :  { %47 = vst.msk [vmem:[#allocation2 + $0x40] sm:$0xff] %vm38_vm0, %v464_v8  ;;  %v485_v11 = vld [vmem:[%s1013_s0 + $0x58] sm:$0xff]  ;;  %48 = vst.msk [vmem:[#allocation2 + $0x48] sm:$0xff] %vm38_vm0, %v475_v9  ;;  %v496_v12 = vld [vmem:[%s1013_s0 + $0x60] sm:$0xff] }
   0x7   :  { %49 = vst.msk [vmem:[#allocation2 + $0x50] sm:$0xff] %vm38_vm0, %v480_v10  ;;  %50 = vst.msk [vmem:[#allocation2 + $0x58] sm:$0xff] %vm38_vm0, %v485_v11  ;;  %v501_v13 = vld [vmem:[%s1013_s0 + $0x68] sm:$0xff]  ;;  %v506_v14 = vld [vmem:[%s1013_s0 + $0x70] sm:$0xff] }
   0x8   :  { %51 = vst.msk [vmem:[#allocation2 + $0x60] sm:$0xff] %vm38_vm0, %v496_v12  ;;  %52 = vst.msk [vmem:[#allocation2 + $0x68] sm:$0xff] %vm38_vm0, %v501_v13  ;;  %v517_v15 = vld [vmem:[%s1013_s0 + $0x78] sm:$0xff]  ;;  %v522_v16 = vld [vmem:[%s1013_s0 + $0x80] sm:$0xff] }
   0x9   :  { %53 = vst.msk [vmem:[#allocation2 + $0x70] sm:$0xff] %vm38_vm0, %v506_v14  ;;  %v527_v17 = vld [vmem:[%s1013_s0 + $0x88] sm:$0xff]  ;;  %54 = vst.msk [vmem:[#allocation2 + $0x78] sm:$0xff] %vm38_vm0, %v517_v15  ;;  %v538_v18 = vld [vmem:[%s1013_s0 + $0x90] sm:$0xff] }
   0xa   :  { %55 = vst.msk [vmem:[#allocation2 + $0x80] sm:$0xff] %vm38_vm0, %v522_v16  ;;  %56 = vst.msk [vmem:[#allocation2 + $0x88] sm:$0xff] %vm38_vm0, %v527_v17  ;;  %v543_v19 = vld [vmem:[%s1013_s0 + $0x98] sm:$0xff]  ;;  %v548_v20 = vld [vmem:[%s1013_s0 + $0xa0] sm:$0xff] }
   0xb   :  { %57 = vst.msk [vmem:[#allocation2 + $0x90] sm:$0xff] %vm38_vm0, %v538_v18  ;;  %58 = vst.msk [vmem:[#allocation2 + $0x98] sm:$0xff] %vm38_vm0, %v543_v19  ;;  %v559_v21 = vld [vmem:[%s1013_s0 + $0xa8] sm:$0xff]  ;;  %v564_v22 = vld [vmem:[%s1013_s0 + $0xb0] sm:$0xff] }
   0xc   :  { %59 = vst.msk [vmem:[#allocation2 + $0xa0] sm:$0xff] %vm38_vm0, %v548_v20  ;;  %v569_v23 = vld [vmem:[%s1013_s0 + $0xb8] sm:$0xff]  ;;  %60 = vst.msk [vmem:[#allocation2 + $0xa8] sm:$0xff] %vm38_vm0, %v559_v21  ;;  %v580_v24 = vld [vmem:[%s1013_s0 + $0xc0] sm:$0xff] }
   0xd   :  { %61 = vst.msk [vmem:[#allocation2 + $0xb0] sm:$0xff] %vm38_vm0, %v564_v22  ;;  %62 = vst.msk [vmem:[#allocation2 + $0xb8] sm:$0xff] %vm38_vm0, %v569_v23  ;;  %v585_v25 = vld [vmem:[%s1013_s0 + $0xc8] sm:$0xff]  ;;  %v590_v26 = vld [vmem:[%s1013_s0 + $0xd0] sm:$0xff] }
   0xe   :  { %63 = vst.msk [vmem:[#allocation2 + $0xc0] sm:$0xff] %vm38_vm0, %v580_v24  ;;  %64 = vst.msk [vmem:[#allocation2 + $0xc8] sm:$0xff] %vm38_vm0, %v585_v25  ;;  %v601_v27 = vld [vmem:[%s1013_s0 + $0xd8] sm:$0xff]  ;;  %v606_v28 = vld [vmem:[%s1013_s0 + $0xe0] sm:$0xff] }
   0xf   :  { %65 = vst.msk [vmem:[#allocation2 + $0xd0] sm:$0xff] %vm38_vm0, %v590_v26  ;;  %v611_v29 = vld [vmem:[%s1013_s0 + $0xe8] sm:$0xff]  ;;  %66 = vst.msk [vmem:[#allocation2 + $0xd8] sm:$0xff] %vm38_vm0, %v601_v27  ;;  %v100_v30 = vld [vmem:[#allocation2] sm:$0xff] }
  0x10   :  { %67 = vst.msk [vmem:[#allocation2 + $0xe0] sm:$0xff] %vm38_vm0, %v606_v28  ;;  %68 = vst.msk [vmem:[#allocation2 + $0xe8] sm:$0xff] %vm38_vm0, %v611_v29  ;;  %v101_v31 = vld [vmem:[#allocation2 + $0x8] sm:$0xff]  ;;  %v102_v32 = vld [vmem:[#allocation2 + $0x10] sm:$0xff]  ;;  %v130_v33 = vmax.f32 %v100_v30, %v424_v2 }
  0x11   :  { %v131_v34 = vmax.f32 %v101_v31, %v433_v3  ;;  %v132_v35 = vmax.f32 %v102_v32, %v438_v4  ;;  %v103_v36 = vld [vmem:[#allocation2 + $0x18] sm:$0xff]  ;;  %v104_v37 = vld [vmem:[#allocation2 + $0x20] sm:$0xff]  ;;  %v105_v38 = vld [vmem:[#allocation2 + $0x28] sm:$0xff] }
  0x12   :  { %v133_v39 = vmax.f32 %v103_v36, %v443_v5  ;;  %v134_v40 = vmax.f32 %v104_v37, %v454_v6  ;;  %v135_v41 = vmax.f32 %v105_v38, %v459_v7  ;;  %v106_v42 = vld [vmem:[#allocation2 + $0x30] sm:$0xff]  ;;  %v107_v43 = vld [vmem:[#allocation2 + $0x38] sm:$0xff]  ;;  %v108_v44 = vld [vmem:[#allocation2 + $0x40] sm:$0xff]  ;;  %160 = vst.msk [vmem:[#allocation2] sm:$0xff] %vm38_vm0, %v130_v33 }
  0x13   :  { %161 = vst.msk [vmem:[#allocation2 + $0x8] sm:$0xff] %vm38_vm0, %v131_v34  ;;  %162 = vst.msk [vmem:[#allocation2 + $0x10] sm:$0xff] %vm38_vm0, %v132_v35  ;;  %v136_v45 = vmax.f32 %v106_v42, %v464_v8  ;;  %v137_v46 = vmax.f32 %v107_v43, %v475_v9  ;;  %v138_v47 = vmax.f32 %v108_v44, %v480_v10  ;;  %v109_v48 = vld [vmem:[#allocation2 + $0x48] sm:$0xff]  ;;  %v110_v49 = vld [vmem:[#allocation2 + $0x50] sm:$0xff] }
  0x14   :  { %v111_v50 = vld [vmem:[#allocation2 + $0x58] sm:$0xff]  ;;  %163 = vst.msk [vmem:[#allocation2 + $0x18] sm:$0xff] %vm38_vm0, %v133_v39  ;;  %164 = vst.msk [vmem:[#allocation2 + $0x20] sm:$0xff] %vm38_vm0, %v134_v40  ;;  %v139_v51 = vmax.f32 %v109_v48, %v485_v11  ;;  %v140_v52 = vmax.f32 %v110_v49, %v496_v12  ;;  %v112_v54 = vld [vmem:[#allocation2 + $0x60] sm:$0xff] }
  0x15   :  { %165 = vst.msk [vmem:[#allocation2 + $0x28] sm:$0xff] %vm38_vm0, %v135_v41  ;;  %v141_v53 = vmax.f32 %v111_v50, %v501_v13  ;;  %v113_v55 = vld [vmem:[#allocation2 + $0x68] sm:$0xff]  ;;  %v114_v56 = vld [vmem:[#allocation2 + $0x70] sm:$0xff]  ;;  %166 = vst.msk [vmem:[#allocation2 + $0x30] sm:$0xff] %vm38_vm0, %v136_v45  ;;  %v142_v57 = vmax.f32 %v112_v54, %v506_v14 }
  0x16   :  { %167 = vst.msk [vmem:[#allocation2 + $0x38] sm:$0xff] %vm38_vm0, %v137_v46  ;;  %168 = vst.msk [vmem:[#allocation2 + $0x40] sm:$0xff] %vm38_vm0, %v138_v47  ;;  %v143_v58 = vmax.f32 %v113_v55, %v517_v15  ;;  %v144_v59 = vmax.f32 %v114_v56, %v522_v16  ;;  %v115_v60 = vld [vmem:[#allocation2 + $0x78] sm:$0xff]  ;;  %v116_v61 = vld [vmem:[#allocation2 + $0x80] sm:$0xff] }
  0x17   :  { %v117_v62 = vld [vmem:[#allocation2 + $0x88] sm:$0xff]  ;;  %169 = vst.msk [vmem:[#allocation2 + $0x48] sm:$0xff] %vm38_vm0, %v139_v51  ;;  %170 = vst.msk [vmem:[#allocation2 + $0x50] sm:$0xff] %vm38_vm0, %v140_v52  ;;  %v145_v63 = vmax.f32 %v115_v60, %v527_v17  ;;  %v146_v0 = vmax.f32 %v116_v61, %v538_v18  ;;  %v118_v2 = vld [vmem:[#allocation2 + $0x90] sm:$0xff] }
  0x18   :  { %171 = vst.msk [vmem:[#allocation2 + $0x58] sm:$0xff] %vm38_vm0, %v141_v53  ;;  %v147_v1 = vmax.f32 %v117_v62, %v543_v19  ;;  %v119_v3 = vld [vmem:[#allocation2 + $0x98] sm:$0xff]  ;;  %v120_v4 = vld [vmem:[#allocation2 + $0xa0] sm:$0xff]  ;;  %172 = vst.msk [vmem:[#allocation2 + $0x60] sm:$0xff] %vm38_vm0, %v142_v57  ;;  %v148_v5 = vmax.f32 %v118_v2, %v548_v20 }
  0x19   :  { %173 = vst.msk [vmem:[#allocation2 + $0x68] sm:$0xff] %vm38_vm0, %v143_v58  ;;  %174 = vst.msk [vmem:[#allocation2 + $0x70] sm:$0xff] %vm38_vm0, %v144_v59  ;;  %v149_v6 = vmax.f32 %v119_v3, %v559_v21  ;;  %v150_v7 = vmax.f32 %v120_v4, %v564_v22  ;;  %v121_v8 = vld [vmem:[#allocation2 + $0xa8] sm:$0xff]  ;;  %v122_v9 = vld [vmem:[#allocation2 + $0xb0] sm:$0xff] }
  0x1a   :  { %v123_v10 = vld [vmem:[#allocation2 + $0xb8] sm:$0xff]  ;;  %175 = vst.msk [vmem:[#allocation2 + $0x78] sm:$0xff] %vm38_vm0, %v145_v63  ;;  %176 = vst.msk [vmem:[#allocation2 + $0x80] sm:$0xff] %vm38_vm0, %v146_v0  ;;  %v151_v11 = vmax.f32 %v121_v8, %v569_v23  ;;  %v152_v12 = vmax.f32 %v122_v9, %v580_v24  ;;  %v124_v14 = vld [vmem:[#allocation2 + $0xc0] sm:$0xff] }
  0x1b   :  { %177 = vst.msk [vmem:[#allocation2 + $0x88] sm:$0xff] %vm38_vm0, %v147_v1  ;;  %v153_v13 = vmax.f32 %v123_v10, %v585_v25  ;;  %v125_v15 = vld [vmem:[#allocation2 + $0xc8] sm:$0xff]  ;;  %v126_v16 = vld [vmem:[#allocation2 + $0xd0] sm:$0xff]  ;;  %178 = vst.msk [vmem:[#allocation2 + $0x90] sm:$0xff] %vm38_vm0, %v148_v5  ;;  %v154_v17 = vmax.f32 %v124_v14, %v590_v26 }
  0x1c   :  { %179 = vst.msk [vmem:[#allocation2 + $0x98] sm:$0xff] %vm38_vm0, %v149_v6  ;;  %180 = vst.msk [vmem:[#allocation2 + $0xa0] sm:$0xff] %vm38_vm0, %v150_v7  ;;  %v155_v18 = vmax.f32 %v125_v15, %v601_v27  ;;  %v156_v19 = vmax.f32 %v126_v16, %v606_v28  ;;  %v127_v20 = vld [vmem:[#allocation2 + $0xd8] sm:$0xff]  ;;  %v403_v21 = vld [vmem:[%s1013_s0 + $0xf0] sm:$0xff] }
  0x1d   :  { %v128_v22 = vld [vmem:[#allocation2 + $0xe0] sm:$0xff]  ;;  %181 = vst.msk [vmem:[#allocation2 + $0xa8] sm:$0xff] %vm38_vm0, %v151_v11  ;;  %182 = vst.msk [vmem:[#allocation2 + $0xb0] sm:$0xff] %vm38_vm0, %v152_v12  ;;  %v157_v23 = vmax.f32 %v127_v20, %v611_v29  ;;  %v404_v25 = vld [vmem:[%s1013_s0 + $0xf8] sm:$0xff] }
  0x1e   :  { %183 = vst.msk [vmem:[#allocation2 + $0xb8] sm:$0xff] %vm38_vm0, %v153_v13  ;;  %v158_v24 = vmax.f32 %v128_v22, %v403_v21  ;;  %v129_v26 = vld [vmem:[#allocation2 + $0xe8] sm:$0xff]  ;;  %v190_v27 = vld [vmem:[#allocation2] sm:$0xff]  ;;  %184 = vst.msk [vmem:[#allocation2 + $0xc0] sm:$0xff] %vm38_vm0, %v154_v17 }
  0x1f   :  { %185 = vst.msk [vmem:[#allocation2 + $0xc8] sm:$0xff] %vm38_vm0, %v155_v18  ;;  %186 = vst.msk [vmem:[#allocation2 + $0xd0] sm:$0xff] %vm38_vm0, %v156_v19  ;;  %v159_v28 = vmax.f32 %v129_v26, %v404_v25  ;;  %v191_v29 = vld [vmem:[#allocation2 + $0x8] sm:$0x7f]  ;;  %v192_v30 = vld [vmem:[#allocation2 + $0x10] sm:$0xff] }
  0x20   :  { %220 = vst.msk [vmem:[%s1014_s1] sm:$0xff] %vm38_vm0, %v190_v27  ;;  %v193_v31 = vld [vmem:[#allocation2 + $0x18] sm:$0x7f]  ;;  %187 = vst.msk [vmem:[#allocation2 + $0xd8] sm:$0xff] %vm38_vm0, %v157_v23  ;;  %v194_v32 = vld [vmem:[#allocation2 + $0x20] sm:$0xff] }
  0x21   :  { %188 = vst.msk [vmem:[#allocation2 + $0xe0] sm:$0xff] %vm38_vm0, %v158_v24  ;;  %223 = vst.msk [vmem:[%s1014_s1 + $0x10] sm:$0xff] %vm38_vm0, %v192_v30  ;;  %v195_v33 = vld [vmem:[#allocation2 + $0x28] sm:$0x7f]  ;;  %v196_v34 = vld [vmem:[#allocation2 + $0x30] sm:$0xff] }
  0x22   :  { %222 = vst.msk [vmem:[%s1014_s1 + $0x8] sm:$0x7f] %vm221_vm1, %v191_v29  ;;  %224 = vst.msk [vmem:[%s1014_s1 + $0x18] sm:$0x7f] %vm221_vm1, %v193_v31  ;;  %v197_v35 = vld [vmem:[#allocation2 + $0x38] sm:$0x7f] }
  0x23   :  { %189 = vst.msk [vmem:[#allocation2 + $0xe8] sm:$0xff] %vm38_vm0, %v159_v28  ;;  %225 = vst.msk [vmem:[%s1014_s1 + $0x20] sm:$0xff] %vm38_vm0, %v194_v32  ;;  %v198_v36 = vld [vmem:[#allocation2 + $0x40] sm:$0xff]  ;;  %v199_v37 = vld [vmem:[#allocation2 + $0x48] sm:$0x7f] }
  0x24   :  { %226 = vst.msk [vmem:[%s1014_s1 + $0x28] sm:$0x7f] %vm221_vm1, %v195_v33  ;;  %228 = vst.msk [vmem:[%s1014_s1 + $0x38] sm:$0x7f] %vm221_vm1, %v197_v35  ;;  %v200_v38 = vld [vmem:[#allocation2 + $0x50] sm:$0xff]  ;;  %v202_v40 = vld [vmem:[#allocation2 + $0x60] sm:$0xff] }
  0x25   :  { %227 = vst.msk [vmem:[%s1014_s1 + $0x30] sm:$0xff] %vm38_vm0, %v196_v34  ;;  %229 = vst.msk [vmem:[%s1014_s1 + $0x40] sm:$0xff] %vm38_vm0, %v198_v36  ;;  %v201_v39 = vld [vmem:[#allocation2 + $0x58] sm:$0x7f]  ;;  %v203_v41 = vld [vmem:[#allocation2 + $0x68] sm:$0x7f] }
  0x26   :  { %230 = vst.msk [vmem:[%s1014_s1 + $0x48] sm:$0x7f] %vm221_vm1, %v199_v37  ;;  %232 = vst.msk [vmem:[%s1014_s1 + $0x58] sm:$0x7f] %vm221_vm1, %v201_v39  ;;  %v204_v42 = vld [vmem:[#allocation2 + $0x70] sm:$0xff]  ;;  %v206_v44 = vld [vmem:[#allocation2 + $0x80] sm:$0xff] }
  0x27   :  { %231 = vst.msk [vmem:[%s1014_s1 + $0x50] sm:$0xff] %vm38_vm0, %v200_v38  ;;  %233 = vst.msk [vmem:[%s1014_s1 + $0x60] sm:$0xff] %vm38_vm0, %v202_v40  ;;  %v205_v43 = vld [vmem:[#allocation2 + $0x78] sm:$0x7f]  ;;  %v207_v45 = vld [vmem:[#allocation2 + $0x88] sm:$0x7f] }
  0x28   :  { %234 = vst.msk [vmem:[%s1014_s1 + $0x68] sm:$0x7f] %vm221_vm1, %v203_v41  ;;  %236 = vst.msk [vmem:[%s1014_s1 + $0x78] sm:$0x7f] %vm221_vm1, %v205_v43  ;;  %v208_v46 = vld [vmem:[#allocation2 + $0x90] sm:$0xff]  ;;  %v210_v48 = vld [vmem:[#allocation2 + $0xa0] sm:$0xff] }
  0x29   :  { %235 = vst.msk [vmem:[%s1014_s1 + $0x70] sm:$0xff] %vm38_vm0, %v204_v42  ;;  %237 = vst.msk [vmem:[%s1014_s1 + $0x80] sm:$0xff] %vm38_vm0, %v206_v44  ;;  %v209_v47 = vld [vmem:[#allocation2 + $0x98] sm:$0x7f]  ;;  %v211_v49 = vld [vmem:[#allocation2 + $0xa8] sm:$0x7f] }
  0x2a   :  { %238 = vst.msk [vmem:[%s1014_s1 + $0x88] sm:$0x7f] %vm221_vm1, %v207_v45  ;;  %240 = vst.msk [vmem:[%s1014_s1 + $0x98] sm:$0x7f] %vm221_vm1, %v209_v47  ;;  %v212_v50 = vld [vmem:[#allocation2 + $0xb0] sm:$0xff]  ;;  %v214_v52 = vld [vmem:[#allocation2 + $0xc0] sm:$0xff] }
  0x2b   :  { %239 = vst.msk [vmem:[%s1014_s1 + $0x90] sm:$0xff] %vm38_vm0, %v208_v46  ;;  %241 = vst.msk [vmem:[%s1014_s1 + $0xa0] sm:$0xff] %vm38_vm0, %v210_v48  ;;  %v213_v51 = vld [vmem:[#allocation2 + $0xb8] sm:$0x7f]  ;;  %v215_v53 = vld [vmem:[#allocation2 + $0xc8] sm:$0x7f] }
  0x2c   :  { %242 = vst.msk [vmem:[%s1014_s1 + $0xa8] sm:$0x7f] %vm221_vm1, %v211_v49  ;;  %244 = vst.msk [vmem:[%s1014_s1 + $0xb8] sm:$0x7f] %vm221_vm1, %v213_v51  ;;  %v216_v54 = vld [vmem:[#allocation2 + $0xd0] sm:$0xff]  ;;  %v218_v56 = vld [vmem:[#allocation2 + $0xe0] sm:$0xff] }
  0x2d   :  { %243 = vst.msk [vmem:[%s1014_s1 + $0xb0] sm:$0xff] %vm38_vm0, %v212_v50  ;;  %245 = vst.msk [vmem:[%s1014_s1 + $0xc0] sm:$0xff] %vm38_vm0, %v214_v52  ;;  %v217_v55 = vld [vmem:[#allocation2 + $0xd8] sm:$0x7f]  ;;  %v219_v57 = vld [vmem:[#allocation2 + $0xe8] sm:$0x7f] }
  0x2e   :  { %246 = vst.msk [vmem:[%s1014_s1 + $0xc8] sm:$0x7f] %vm221_vm1, %v215_v53  ;;  %248 = vst.msk [vmem:[%s1014_s1 + $0xd8] sm:$0x7f] %vm221_vm1, %v217_v55  ;;  %v251_v58 = vld [vmem:[#allocation2 + $0x1] sm:$0xff]  ;;  %v253_v0 = vld [vmem:[#allocation2 + $0x11] sm:$0xff] }
  0x2f   :  { %247 = vst.msk [vmem:[%s1014_s1 + $0xd0] sm:$0xff] %vm38_vm0, %v216_v54  ;;  %249 = vst.msk [vmem:[%s1014_s1 + $0xe0] sm:$0xff] %vm38_vm0, %v218_v56  ;;  %v281_v59 = vld [vmem:[%s1014_s1] sm:$0xff]  ;;  %v252_v60 = vld [vmem:[#allocation2 + $0x9] sm:$0x7f] }
  0x30   :  { %250 = vst.msk [vmem:[%s1014_s1 + $0xe8] sm:$0x7f] %vm221_vm1, %v219_v57  ;;  %v282_v61 = vld [vmem:[%s1014_s1 + $0x8] sm:$0x7f]  ;;  %v311_v62 = vmax.f32 %v281_v59, %v251_v58  ;;  %v283_v1 = vld [vmem:[%s1014_s1 + $0x10] sm:$0xff]  ;;  %v285_v6 = vld [vmem:[%s1014_s1 + $0x20] sm:$0xff] }
  0x31   :  { %v312_v63 = vmax.f32 %v282_v61, %v252_v60  ;;  %v254_v2 = vld [vmem:[#allocation2 + $0x19] sm:$0x7f]  ;;  %v313_v3 = vmax.f32 %v283_v1, %v253_v0  ;;  %v255_v5 = vld [vmem:[#allocation2 + $0x21] sm:$0xff]  ;;  %v256_v9 = vld [vmem:[#allocation2 + $0x29] sm:$0x7f] }
  0x32   :  { %v284_v4 = vld [vmem:[%s1014_s1 + $0x18] sm:$0x7f]  ;;  %341 = vst.msk [vmem:[%s1014_s1] sm:$0xff] %vm38_vm0, %v311_v62  ;;  %v315_v8 = vmax.f32 %v285_v6, %v255_v5  ;;  %v286_v10 = vld [vmem:[%s1014_s1 + $0x28] sm:$0x7f]  ;;  %v287_v13 = vld [vmem:[%s1014_s1 + $0x30] sm:$0xff] }
  0x33   :  { %342 = vst.msk [vmem:[%s1014_s1 + $0x8] sm:$0x7f] %vm221_vm1, %v312_v63  ;;  %v314_v7 = vmax.f32 %v284_v4, %v254_v2  ;;  %v257_v11 = vld [vmem:[#allocation2 + $0x31] sm:$0xff]  ;;  %v316_v12 = vmax.f32 %v286_v10, %v256_v9  ;;  %v258_v14 = vld [vmem:[#allocation2 + $0x39] sm:$0x7f]  ;;  %v259_v18 = vld [vmem:[#allocation2 + $0x41] sm:$0xff] }
  0x34   :  { %343 = vst.msk [vmem:[%s1014_s1 + $0x10] sm:$0xff] %vm38_vm0, %v313_v3  ;;  %v288_v15 = vld [vmem:[%s1014_s1 + $0x38] sm:$0x7f]  ;;  %345 = vst.msk [vmem:[%s1014_s1 + $0x20] sm:$0xff] %vm38_vm0, %v315_v8  ;;  %v317_v16 = vmax.f32 %v287_v13, %v257_v11  ;;  %v289_v19 = vld [vmem:[%s1014_s1 + $0x40] sm:$0xff] }
  0x35   :  { %344 = vst.msk [vmem:[%s1014_s1 + $0x18] sm:$0x7f] %vm221_vm1, %v314_v7  ;;  %v318_v17 = vmax.f32 %v288_v15, %v258_v14  ;;  %v260_v20 = vld [vmem:[#allocation2 + $0x49] sm:$0x7f]  ;;  %346 = vst.msk [vmem:[%s1014_s1 + $0x28] sm:$0x7f] %vm221_vm1, %v316_v12  ;;  %v319_v21 = vmax.f32 %v289_v19, %v259_v18 }
  0x36   :  { %v290_v22 = vld [vmem:[%s1014_s1 + $0x48] sm:$0x7f]  ;;  %v261_v23 = vld [vmem:[#allocation2 + $0x51] sm:$0xff]  ;;  %347 = vst.msk [vmem:[%s1014_s1 + $0x30] sm:$0xff] %vm38_vm0, %v317_v16  ;;  %v262_v27 = vld [vmem:[#allocation2 + $0x59] sm:$0x7f] }
  0x37   :  { %v291_v24 = vld [vmem:[%s1014_s1 + $0x50] sm:$0xff]  ;;  %348 = vst.msk [vmem:[%s1014_s1 + $0x38] sm:$0x7f] %vm221_vm1, %v318_v17  ;;  %v320_v25 = vmax.f32 %v290_v22, %v260_v20  ;;  %v292_v28 = vld [vmem:[%s1014_s1 + $0x58] sm:$0x7f]  ;;  %v263_v29 = vld [vmem:[#allocation2 + $0x61] sm:$0xff] }
  0x38   :  { %v321_v26 = vmax.f32 %v291_v24, %v261_v23  ;;  %349 = vst.msk [vmem:[%s1014_s1 + $0x40] sm:$0xff] %vm38_vm0, %v319_v21  ;;  %v322_v30 = vmax.f32 %v292_v28, %v262_v27  ;;  %v293_v31 = vld [vmem:[%s1014_s1 + $0x60] sm:$0xff]  ;;  %v264_v32 = vld [vmem:[#allocation2 + $0x69] sm:$0x7f]  ;;  %v265_v36 = vld [vmem:[#allocation2 + $0x71] sm:$0xff] }
  0x39   :  { %v294_v33 = vld [vmem:[%s1014_s1 + $0x68] sm:$0x7f]  ;;  %350 = vst.msk [vmem:[%s1014_s1 + $0x48] sm:$0x7f] %vm221_vm1, %v320_v25  ;;  %v323_v34 = vmax.f32 %v293_v31, %v263_v29  ;;  %v295_v37 = vld [vmem:[%s1014_s1 + $0x70] sm:$0xff]  ;;  %v297_v42 = vld [vmem:[%s1014_s1 + $0x80] sm:$0xff] }
  0x3a   :  { %351 = vst.msk [vmem:[%s1014_s1 + $0x50] sm:$0xff] %vm38_vm0, %v321_v26  ;;  %v324_v35 = vmax.f32 %v294_v33, %v264_v32  ;;  %v266_v38 = vld [vmem:[#allocation2 + $0x79] sm:$0x7f]  ;;  %v325_v39 = vmax.f32 %v295_v37, %v265_v36  ;;  %v267_v41 = vld [vmem:[#allocation2 + $0x81] sm:$0xff]  ;;  %v268_v45 = vld [vmem:[#allocation2 + $0x89] sm:$0x7f] }
  0x3b   :  { %352 = vst.msk [vmem:[%s1014_s1 + $0x58] sm:$0x7f] %vm221_vm1, %v322_v30  ;;  %v296_v40 = vld [vmem:[%s1014_s1 + $0x78] sm:$0x7f]  ;;  %v327_v44 = vmax.f32 %v297_v42, %v267_v41  ;;  %v298_v46 = vld [vmem:[%s1014_s1 + $0x88] sm:$0x7f] }
  0x3c   :  { %353 = vst.msk [vmem:[%s1014_s1 + $0x60] sm:$0xff] %vm38_vm0, %v323_v34  ;;  %v326_v43 = vmax.f32 %v296_v40, %v266_v38  ;;  %v269_v47 = vld [vmem:[#allocation2 + $0x91] sm:$0xff]  ;;  %355 = vst.msk [vmem:[%s1014_s1 + $0x70] sm:$0xff] %vm38_vm0, %v325_v39  ;;  %v328_v48 = vmax.f32 %v298_v46, %v268_v45  ;;  %v270_v50 = vld [vmem:[#allocation2 + $0x99] sm:$0x7f] }
  0x3d   :  { %354 = vst.msk [vmem:[%s1014_s1 + $0x68] sm:$0x7f] %vm221_vm1, %v324_v35  ;;  %v299_v49 = vld [vmem:[%s1014_s1 + $0x90] sm:$0xff]  ;;  %v300_v51 = vld [vmem:[%s1014_s1 + $0x98] sm:$0x7f]  ;;  %v271_v54 = vld [vmem:[#allocation2 + $0xa1] sm:$0xff] }
  0x3e   :  { %356 = vst.msk [vmem:[%s1014_s1 + $0x78] sm:$0x7f] %vm221_vm1, %v326_v43  ;;  %v329_v52 = vmax.f32 %v299_v49, %v269_v47  ;;  %v330_v53 = vmax.f32 %v300_v51, %v270_v50  ;;  %v301_v55 = vld [vmem:[%s1014_s1 + $0xa0] sm:$0xff]  ;;  %v272_v56 = vld [vmem:[#allocation2 + $0xa9] sm:$0x7f]  ;;  %v273_v59 = vld [vmem:[#allocation2 + $0xb1] sm:$0xff] }
  0x3f   :  { %357 = vst.msk [vmem:[%s1014_s1 + $0x80] sm:$0xff] %vm38_vm0, %v327_v44  ;;  %v331_v57 = vmax.f32 %v301_v55, %v271_v54  ;;  %v302_v58 = vld [vmem:[%s1014_s1 + $0xa8] sm:$0x7f]  ;;  %v303_v60 = vld [vmem:[%s1014_s1 + $0xb0] sm:$0xff]  ;;  %v274_v63 = vld [vmem:[#allocation2 + $0xb9] sm:$0x7f] }
  0x40   :  { %358 = vst.msk [vmem:[%s1014_s1 + $0x88] sm:$0x7f] %vm221_vm1, %v328_v48  ;;  %360 = vst.msk [vmem:[%s1014_s1 + $0x98] sm:$0x7f] %vm221_vm1, %v330_v53  ;;  %v332_v61 = vmax.f32 %v302_v58, %v272_v56  ;;  %v333_v62 = vmax.f32 %v303_v60, %v273_v59  ;;  %v304_v0 = vld [vmem:[%s1014_s1 + $0xb8] sm:$0x7f] }
  0x41   :  { %359 = vst.msk [vmem:[%s1014_s1 + $0x90] sm:$0xff] %vm38_vm0, %v329_v52  ;;  %v275_v1 = vld [vmem:[#allocation2 + $0xc1] sm:$0xff]  ;;  %361 = vst.msk [vmem:[%s1014_s1 + $0xa0] sm:$0xff] %vm38_vm0, %v331_v57  ;;  %v334_v2 = vmax.f32 %v304_v0, %v274_v63  ;;  %v276_v4 = vld [vmem:[#allocation2 + $0xc9] sm:$0x7f] }
  0x42   :  { %v305_v3 = vld [vmem:[%s1014_s1 + $0xc0] sm:$0xff]  ;;  %v306_v5 = vld [vmem:[%s1014_s1 + $0xc8] sm:$0x7f]  ;;  %362 = vst.msk [vmem:[%s1014_s1 + $0xa8] sm:$0x7f] %vm221_vm1, %v332_v61  ;;  %v277_v8 = vld [vmem:[#allocation2 + $0xd1] sm:$0xff] }
  0x43   :  { %363 = vst.msk [vmem:[%s1014_s1 + $0xb0] sm:$0xff] %vm38_vm0, %v333_v62  ;;  %v335_v6 = vmax.f32 %v305_v3, %v275_v1  ;;  %v336_v7 = vmax.f32 %v306_v5, %v276_v4  ;;  %v307_v9 = vld [vmem:[%s1014_s1 + $0xd0] sm:$0xff]  ;;  %v278_v10 = vld [vmem:[#allocation2 + $0xd9] sm:$0x7f]  ;;  %v279_v13 = vld [vmem:[#allocation2 + $0xe1] sm:$0xff] }
  0x44   :  { %364 = vst.msk [vmem:[%s1014_s1 + $0xb8] sm:$0x7f] %vm221_vm1, %v334_v2  ;;  %v337_v11 = vmax.f32 %v307_v9, %v277_v8  ;;  %v308_v12 = vld [vmem:[%s1014_s1 + $0xd8] sm:$0x7f]  ;;  %v309_v14 = vld [vmem:[%s1014_s1 + $0xe0] sm:$0xff] }
  0x45   :  { %365 = vst.msk [vmem:[%s1014_s1 + $0xc0] sm:$0xff] %vm38_vm0, %v335_v6  ;;  %v338_v15 = vmax.f32 %v308_v12, %v278_v10  ;;  %v339_v16 = vmax.f32 %v309_v14, %v279_v13  ;;  %v280_v17 = vld [vmem:[#allocation2 + $0xe9] sm:$0x7f] }
  0x46   :  { %366 = vst.msk [vmem:[%s1014_s1 + $0xc8] sm:$0x7f] %vm221_vm1, %v336_v7  ;;  %v310_v18 = vld [vmem:[%s1014_s1 + $0xe8] sm:$0x7f] }
  0x47   :  { %367 = vst.msk [vmem:[%s1014_s1 + $0xd0] sm:$0xff] %vm38_vm0, %v337_v11  ;;  %v340_v19 = vmax.f32 %v310_v18, %v280_v17  ;;  %369 = vst.msk [vmem:[%s1014_s1 + $0xe0] sm:$0xff] %vm38_vm0, %v339_v16 }
  0x48   :  { %368 = vst.msk [vmem:[%s1014_s1 + $0xd8] sm:$0x7f] %vm221_vm1, %v338_v15 }
  0x49   :  { %370 = vst.msk [vmem:[%s1014_s1 + $0xe8] sm:$0x7f] %vm221_vm1, %v340_v19 }

</bundles_post_ra>
